<compile_context>
chip_gen: v5e
topology: v5e:2x2
jax: 0.10.0
libtpu: 0.0.40
codegen_flags: <defaults>
</compile_context>

<pallas_src>
import jax
import jax.numpy as jnp
from jax.experimental import pallas as pl
from jax.experimental.pallas import tpu as pltpu


def _round_up(x, m):
    return ((x + m - 1) // m) * m


# ----------------------------------------------------------------------------
# Pallas kernel: fused (im2col-matmul with BN-scale folded into W) + bias + ReLU
# ----------------------------------------------------------------------------
def _matmul_bias_relu_kernel(p_ref, w_ref, b_ref, o_ref):
    # p_ref: (TM, K)        bf16 im2col patch tile
    # w_ref: (K, Cout_pad)  bf16 weights, BN scale already folded in
    # b_ref: (1, Cout_pad)  f32 folded BN bias
    # o_ref: (TM, Cout_pad) f32 or bf16 output tile
    acc = jnp.dot(p_ref[...], w_ref[...], preferred_element_type=jnp.float32)
    o_ref[...] = jnp.maximum(acc + b_ref[...], 0.0).astype(o_ref.dtype)


def _pick_tm(M, K, cout_pad, out_bytes):
    """Largest M-tile (multiple of 128, <= 2048) fitting a ~8 MiB stream budget."""
    # Double-buffered streamed buffers: patches (tm, K) bf16 + outputs (tm, cout_pad).
    per_row = 2 * (K * 2 + cout_pad * out_bytes)
    budget = 8 * 1024 * 1024
    tm = (budget // max(per_row, 1)) // 128 * 128
    tm = max(128, min(tm, 2048))
    return min(tm, _round_up(M, 128))


def fused_matmul_bias_relu(patches, w_mat, bias, tm, out_dtype):
    """patches:(M,K) bf16, w_mat:(K,Cout_pad) bf16, bias:(1,Cout_pad) f32.

    Returns (M, Cout_pad) in out_dtype.  M must be a multiple of tm and
    Cout_pad a multiple of 128 (caller pads).
    """
    M, K = patches.shape
    K2, Cout_pad = w_mat.shape
    assert K == K2
    assert Cout_pad % 128 == 0
    assert M % tm == 0, (M, tm)

    grid = (M // tm,)
    out_bytes = jnp.dtype(out_dtype).itemsize

    flops = 2 * M * K * Cout_pad
    bytes_accessed = (
        patches.size * patches.dtype.itemsize
        + w_mat.size * w_mat.dtype.itemsize
        + bias.size * bias.dtype.itemsize
        + M * Cout_pad * out_bytes
    )

    return pl.pallas_call(
        _matmul_bias_relu_kernel,
        out_shape=jax.ShapeDtypeStruct((M, Cout_pad), out_dtype),
        grid=grid,
        in_specs=[
            pl.BlockSpec((tm, K), lambda m: (m, 0)),          # streamed patch tiles
            pl.BlockSpec((K, Cout_pad), lambda m: (0, 0)),    # resident weights
            pl.BlockSpec((1, Cout_pad), lambda m: (0, 0)),    # resident bias
        ],
        out_specs=pl.BlockSpec((tm, Cout_pad), lambda m: (m, 0)),
        compiler_params=pltpu.CompilerParams(
            dimension_semantics=("parallel",),                # shard M across TCs
            vmem_limit_bytes=32 * 1024 * 1024,
        ),
        cost_estimate=pl.CostEstimate(
            flops=flops, transcendentals=0, bytes_accessed=bytes_accessed
        ),
    )(patches, w_mat, bias)


# ----------------------------------------------------------------------------
# Glue: im2col (NHWC, bf16) and ConvBnRelu layer wrapper
# ----------------------------------------------------------------------------
def im2col(x_nhwc, kh, kw, stride, pad):
    N, H, W, C = x_nhwc.shape
    xp = jnp.pad(x_nhwc, ((0, 0), (pad, pad), (pad, pad), (0, 0)))
    OH = (H + 2 * pad - kh) // stride + 1
    OW = (W + 2 * pad - kw) // stride + 1
    slabs = []
    for i in range(kh):
        for j in range(kw):
            slabs.append(
                xp[:, i:i + stride * OH:stride, j:j + stride * OW:stride, :]
            )
    # (N, OH, OW, kh*kw, C) -> (N*OH*OW, kh*kw*C); K index = (i*kw + j)*C + c
    p = jnp.stack(slabs, axis=3)
    return p.reshape(N * OH * OW, kh * kw * C), OH, OW


def conv_bn_relu(x_nhwc, params, kh, kw, stride, pad, out_dtype=jnp.float32):
    """ConvBnRelu (no conv bias, BN in eval mode, ReLU). Input/output NHWC."""
    w, gamma, beta, mean, var = (
        params["w"], params["gamma"], params["beta"], params["mean"], params["var"]
    )
    eps = 1e-5
    Cout, Cin = w.shape[0], w.shape[1]
    N = x_nhwc.shape[0]

    # im2col in bf16 to halve the duplicated-patch HBM traffic.
    # TODO(synk): further cut the kh*kw im2col HBM blowup by feeding the padded
    # NHWC input directly with a kh*kw reduction grid axis + VMEM accumulator.
    patches, OH, OW = im2col(x_nhwc.astype(jnp.bfloat16), kh, kw, stride, pad)
    M, K = patches.shape

    # torch weight (Cout, Cin, kh, kw) -> (kh, kw, Cin, Cout) -> (kh*kw*Cin, Cout)
    w_mat = jnp.transpose(w, (2, 3, 1, 0)).reshape(kh * kw * Cin, Cout)

    # Fold BN scale into weight columns; bias stays as the epilogue add.
    scale = gamma / jnp.sqrt(var + eps)                          # (Cout,)
    w_fold = (w_mat * scale[None, :]).astype(jnp.bfloat16)       # (K, Cout)
    bias = (beta - mean * scale).astype(jnp.float32)             # (Cout,)

    # Pad Cout -> multiple of 128 (lane-dense output stores, full MXU width).
    Cout_pad = _round_up(Cout, 128)
    if Cout_pad != Cout:
        w_fold = jnp.pad(w_fold, ((0, 0), (0, Cout_pad - Cout)))
        bias = jnp.pad(bias, (0, Cout_pad - Cout))
    bias = bias.reshape(1, Cout_pad)

    # Pad M -> multiple of the VMEM-budgeted tile size.
    out_bytes = jnp.dtype(out_dtype).itemsize
    tm = _pick_tm(M, K, Cout_pad, out_bytes)
    M_pad = _round_up(M, tm)
    if M_pad != M:
        patches = jnp.pad(patches, ((0, M_pad - M), (0, 0)))

    out = fused_matmul_bias_relu(patches, w_fold, bias, tm, out_dtype)
    out = out[:M, :Cout]
    return out.reshape(N, OH, OW, Cout)


# ----------------------------------------------------------------------------
# SpatialPath
# ----------------------------------------------------------------------------
def init_conv_bn_params(key, cin, cout, k):
    k_w, k_g, k_b, k_m, k_v = jax.random.split(key, 5)
    return {
        "w": 0.1 * jax.random.normal(k_w, (cout, cin, k, k), jnp.float32),
        "gamma": 1.0 + 0.1 * jax.random.normal(k_g, (cout,), jnp.float32),
        "beta": 0.1 * jax.random.normal(k_b, (cout,), jnp.float32),
        "mean": 0.1 * jax.random.normal(k_m, (cout,), jnp.float32),
        "var": 1.0 + 0.1 * jax.random.uniform(k_v, (cout,), jnp.float32),
    }


def init_spatial_path_params(key, in_planes, out_planes, inner=64):
    k1, k2, k3, k4 = jax.random.split(key, 4)
    return {
        "conv_7x7": init_conv_bn_params(k1, in_planes, inner, 7),
        "conv_3x3_1": init_conv_bn_params(k2, inner, inner, 3),
        "conv_3x3_2": init_conv_bn_params(k3, inner, inner, 3),
        "conv_1x1": init_conv_bn_params(k4, inner, out_planes, 1),
    }


@jax.jit
def spatial_path_forward(x_nchw, params):
    # NCHW -> NHWC
    x = jnp.transpose(x_nchw, (0, 2, 3, 1))

    # x_1 is returned, keep it f32; interior activations stay bf16 (they would
    # be rounded to bf16 by the next layer's im2col anyway).
    x = conv_bn_relu(x, params["conv_7x7"], 7, 7, 2, 3, out_dtype=jnp.float32)
    x_1 = x
    x = conv_bn_relu(x, params["conv_3x3_1"], 3, 3, 2, 1, out_dtype=jnp.bfloat16)
    x = conv_bn_relu(x, params["conv_3x3_2"], 3, 3, 2, 1, out_dtype=jnp.bfloat16)
    output = conv_bn_relu(x, params["conv_1x1"], 1, 1, 1, 0, out_dtype=jnp.float32)

    # NHWC -> NCHW (match PyTorch return convention)
    return (jnp.transpose(output, (0, 3, 1, 2)),
            jnp.transpose(x_1, (0, 3, 1, 2)))


# ----------------------------------------------------------------------------
# Reference (pure JAX, f32 conv) for sanity checking
# ----------------------------------------------------------------------------
def ref_conv_bn_relu_nchw(x, p, stride, pad):
    eps = 1e-5
    y = jax.lax.conv_general_dilated(
        x, p["w"], window_strides=(stride, stride),
        padding=[(pad, pad), (pad, pad)],
        dimension_numbers=("NCHW", "OIHW", "NCHW"))
    scale = (p["gamma"] / jnp.sqrt(p["var"] + eps)).reshape(1, -1, 1, 1)
    bias = (p["beta"] - p["mean"] * p["gamma"] / jnp.sqrt(p["var"] + eps)).reshape(1, -1, 1, 1)
    return jnp.maximum(y * scale + bias, 0.0)


def ref_spatial_path(x, params):
    x = ref_conv_bn_relu_nchw(x, params["conv_7x7"], 2, 3)
    x_1 = x
    x = ref_conv_bn_relu_nchw(x, params["conv_3x3_1"], 2, 1)
    x = ref_conv_bn_relu_nchw(x, params["conv_3x3_2"], 2, 1)
    out = ref_conv_bn_relu_nchw(x, params["conv_1x1"], 1, 0)
    return out, x_1


if __name__ == "__main__":
    key = jax.random.PRNGKey(0)
    k_x, k_p = jax.random.split(key)

    N, in_planes, H, W = 2, 4, 16, 16
    out_planes = 8

    x = jax.random.normal(k_x, (N, in_planes, H, W), jnp.float32)
    params = init_spatial_path_params(k_p, in_planes, out_planes)

    out, x_1 = spatial_path_forward(x, params)
    out = jax.block_until_ready(out)
    x_1 = jax.block_until_ready(x_1)

    assert out.shape == (N, out_planes, 2, 2), out.shape
    assert x_1.shape == (N, 64, 8, 8), x_1.shape

    # Sanity check against an f32 reference (kernel matmuls use bf16 operands
    # with f32 accumulation, so tolerances are bf16-appropriate).
    ref_out, ref_x1 = ref_spatial_path(x, params)
    assert jnp.allclose(out, ref_out, atol=1e-1, rtol=5e-2), (
        float(jnp.max(jnp.abs(out - ref_out))))
    assert jnp.allclose(x_1, ref_x1, atol=5e-2, rtol=5e-2), (
        float(jnp.max(jnp.abs(x_1 - ref_x1))))

    print("KERNEL_OK")
</pallas_src>

<mosaic_0001>
module attributes {stable_mosaic.version = 11 : i64} {
  func.func @_matmul_bias_relu_kernel(%arg0: i32, %arg1: memref<128x196xbf16, #tpu.memory_space<vmem>>, %arg2: memref<196x128xbf16, #tpu.memory_space<vmem>>, %arg3: memref<1x128xf32, #tpu.memory_space<vmem>>, %arg4: memref<128x128xf32, #tpu.memory_space<vmem>>) attributes {dimension_semantics = [#tpu.dimension_semantics<parallel>], iteration_bounds = array<i64: 1>, scalar_prefetch = 0 : i64, scratch_operands = 0 : i64, tpu.core_type = #tpu.core_type<tc>, window_params = [{transform_indices = @transform_0, window_bounds = array<i64: 128, 196>}, {pipeline_mode = #tpu.pipeline_mode<synchronous>, transform_indices = @transform_1, window_bounds = array<i64: 196, 128>}, {pipeline_mode = #tpu.pipeline_mode<synchronous>, transform_indices = @transform_2, window_bounds = array<i64: 1, 128>}, {transform_indices = @transform_3, window_bounds = array<i64: 128, 128>}]} {
    %c0 = arith.constant 0 : index
    %c0_0 = arith.constant 0 : index
    %0 = vector.load %arg1[%c0, %c0_0] : memref<128x196xbf16, #tpu.memory_space<vmem>>, vector<128x196xbf16>
    %c0_1 = arith.constant 0 : index
    %c0_2 = arith.constant 0 : index
    %1 = vector.load %arg2[%c0_1, %c0_2] : memref<196x128xbf16, #tpu.memory_space<vmem>>, vector<196x128xbf16>
    %cst = arith.constant dense<0.000000e+00> : vector<128x128xf32>
    %2 = tpu.matmul %0, %1, %cst {dimension_numbers = #tpu.dot_dimension_numbers<[1], [0], [0], [1], [0, 0, 1, 1], [], []>} : vector<128x196xbf16>, vector<196x128xbf16>, vector<128x128xf32> -> vector<128x128xf32>
    %c0_3 = arith.constant 0 : index
    %c0_4 = arith.constant 0 : index
    %3 = vector.load %arg3[%c0_3, %c0_4] : memref<1x128xf32, #tpu.memory_space<vmem>>, vector<1x128xf32>
    %4 = vector.broadcast %3 : vector<1x128xf32> to vector<128x128xf32>
    %5 = arith.addf %2, %4 : vector<128x128xf32>
    %cst_5 = arith.constant 0.000000e+00 : f32
    %6 = vector.broadcast %cst_5 : f32 to vector<128x128xf32>
    %7 = arith.maximumf %5, %6 : vector<128x128xf32>
    %c0_6 = arith.constant 0 : index
    %c0_7 = arith.constant 0 : index
    %8 = vector.load %arg4[%c0_6, %c0_7] : memref<128x128xf32, #tpu.memory_space<vmem>>, vector<128x128xf32>
    tpu.vector_store %arg4[%c0_6, %c0_7], %7 {strides = array<i32>} : memref<128x128xf32, #tpu.memory_space<vmem>>, vector<128x128xf32>,
    return
  }
  func.func @transform_0(%arg0: i32) -> (i32, i32) {
    %c0_i32 = arith.constant 0 : i32
    %c0_i32_0 = arith.constant 0 : i32
    return %arg0, %c0_i32 : i32, i32
  }
  func.func @transform_1(%arg0: i32) -> (i32, i32) {
    %c0_i32 = arith.constant 0 : i32
    %c0_i32_0 = arith.constant 0 : i32
    %c0_i32_1 = arith.constant 0 : i32
    return %c0_i32, %c0_i32_0 : i32, i32
  }
  func.func @transform_2(%arg0: i32) -> (i32, i32) {
    %c0_i32 = arith.constant 0 : i32
    %c0_i32_0 = arith.constant 0 : i32
    %c0_i32_1 = arith.constant 0 : i32
    return %c0_i32, %c0_i32_0 : i32, i32
  }
  func.func @transform_3(%arg0: i32) -> (i32, i32) {
    %c0_i32 = arith.constant 0 : i32
    %c0_i32_0 = arith.constant 0 : i32
    return %arg0, %c0_i32 : i32, i32
  }
}

module attributes {stable_mosaic.version = 11 : i64} {
  func.func @_matmul_bias_relu_kernel(%arg0: i32, %arg1: memref<128x576xbf16, #tpu.memory_space<vmem>>, %arg2: memref<576x128xbf16, #tpu.memory_space<vmem>>, %arg3: memref<1x128xf32, #tpu.memory_space<vmem>>, %arg4: memref<128x128xbf16, #tpu.memory_space<vmem>>) attributes {dimension_semantics = [#tpu.dimension_semantics<parallel>], iteration_bounds = array<i64: 1>, scalar_prefetch = 0 : i64, scratch_operands = 0 : i64, tpu.core_type = #tpu.core_type<tc>, window_params = [{transform_indices = @transform_0, window_bounds = array<i64: 128, 576>}, {pipeline_mode = #tpu.pipeline_mode<synchronous>, transform_indices = @transform_1, window_bounds = array<i64: 576, 128>}, {pipeline_mode = #tpu.pipeline_mode<synchronous>, transform_indices = @transform_2, window_bounds = array<i64: 1, 128>}, {transform_indices = @transform_3, window_bounds = array<i64: 128, 128>}]} {
    %c0 = arith.constant 0 : index
    %c0_0 = arith.constant 0 : index
    %0 = vector.load %arg1[%c0, %c0_0] : memref<128x576xbf16, #tpu.memory_space<vmem>>, vector<128x576xbf16>
    %c0_1 = arith.constant 0 : index
    %c0_2 = arith.constant 0 : index
    %1 = vector.load %arg2[%c0_1, %c0_2] : memref<576x128xbf16, #tpu.memory_space<vmem>>, vector<576x128xbf16>
    %cst = arith.constant dense<0.000000e+00> : vector<128x128xf32>
    %2 = tpu.matmul %0, %1, %cst {dimension_numbers = #tpu.dot_dimension_numbers<[1], [0], [0], [1], [0, 0, 1, 1], [], []>} : vector<128x576xbf16>, vector<576x128xbf16>, vector<128x128xf32> -> vector<128x128xf32>
    %c0_3 = arith.constant 0 : index
    %c0_4 = arith.constant 0 : index
    %3 = vector.load %arg3[%c0_3, %c0_4] : memref<1x128xf32, #tpu.memory_space<vmem>>, vector<1x128xf32>
    %4 = vector.broadcast %3 : vector<1x128xf32> to vector<128x128xf32>
    %5 = arith.addf %2, %4 : vector<128x128xf32>
    %cst_5 = arith.constant 0.000000e+00 : f32
    %6 = vector.broadcast %cst_5 : f32 to vector<128x128xf32>
    %7 = arith.maximumf %5, %6 : vector<128x128xf32>
    %8 = arith.truncf %7 : vector<128x128xf32> to vector<128x128xbf16>
    %c0_6 = arith.constant 0 : index
    %c0_7 = arith.constant 0 : index
    %9 = vector.load %arg4[%c0_6, %c0_7] : memref<128x128xbf16, #tpu.memory_space<vmem>>, vector<128x128xbf16>
    tpu.vector_store %arg4[%c0_6, %c0_7], %8 {strides = array<i32>} : memref<128x128xbf16, #tpu.memory_space<vmem>>, vector<128x128xbf16>,
    return
  }
  func.func @transform_0(%arg0: i32) -> (i32, i32) {
    %c0_i32 = arith.constant 0 : i32
    %c0_i32_0 = arith.constant 0 : i32
    return %arg0, %c0_i32 : i32, i32
  }
  func.func @transform_1(%arg0: i32) -> (i32, i32) {
    %c0_i32 = arith.constant 0 : i32
    %c0_i32_0 = arith.constant 0 : i32
    %c0_i32_1 = arith.constant 0 : i32
    return %c0_i32, %c0_i32_0 : i32, i32
  }
  func.func @transform_2(%arg0: i32) -> (i32, i32) {
    %c0_i32 = arith.constant 0 : i32
    %c0_i32_0 = arith.constant 0 : i32
    %c0_i32_1 = arith.constant 0 : i32
    return %c0_i32, %c0_i32_0 : i32, i32
  }
  func.func @transform_3(%arg0: i32) -> (i32, i32) {
    %c0_i32 = arith.constant 0 : i32
    %c0_i32_0 = arith.constant 0 : i32
    return %arg0, %c0_i32 : i32, i32
  }
}

module attributes {stable_mosaic.version = 11 : i64} {
  func.func @_matmul_bias_relu_kernel(%arg0: i32, %arg1: memref<128x64xbf16, #tpu.memory_space<vmem>>, %arg2: memref<64x128xbf16, #tpu.memory_space<vmem>>, %arg3: memref<1x128xf32, #tpu.memory_space<vmem>>, %arg4: memref<128x128xf32, #tpu.memory_space<vmem>>) attributes {dimension_semantics = [#tpu.dimension_semantics<parallel>], iteration_bounds = array<i64: 1>, scalar_prefetch = 0 : i64, scratch_operands = 0 : i64, tpu.core_type = #tpu.core_type<tc>, window_params = [{transform_indices = @transform_0, window_bounds = array<i64: 128, 64>}, {pipeline_mode = #tpu.pipeline_mode<synchronous>, transform_indices = @transform_1, window_bounds = array<i64: 64, 128>}, {pipeline_mode = #tpu.pipeline_mode<synchronous>, transform_indices = @transform_2, window_bounds = array<i64: 1, 128>}, {transform_indices = @transform_3, window_bounds = array<i64: 128, 128>}]} {
    %c0 = arith.constant 0 : index
    %c0_0 = arith.constant 0 : index
    %0 = vector.load %arg1[%c0, %c0_0] : memref<128x64xbf16, #tpu.memory_space<vmem>>, vector<128x64xbf16>
    %c0_1 = arith.constant 0 : index
    %c0_2 = arith.constant 0 : index
    %1 = vector.load %arg2[%c0_1, %c0_2] : memref<64x128xbf16, #tpu.memory_space<vmem>>, vector<64x128xbf16>
    %cst = arith.constant dense<0.000000e+00> : vector<128x128xf32>
    %2 = tpu.matmul %0, %1, %cst {dimension_numbers = #tpu.dot_dimension_numbers<[1], [0], [0], [1], [0, 0, 1, 1], [], []>} : vector<128x64xbf16>, vector<64x128xbf16>, vector<128x128xf32> -> vector<128x128xf32>
    %c0_3 = arith.constant 0 : index
    %c0_4 = arith.constant 0 : index
    %3 = vector.load %arg3[%c0_3, %c0_4] : memref<1x128xf32, #tpu.memory_space<vmem>>, vector<1x128xf32>
    %4 = vector.broadcast %3 : vector<1x128xf32> to vector<128x128xf32>
    %5 = arith.addf %2, %4 : vector<128x128xf32>
    %cst_5 = arith.constant 0.000000e+00 : f32
    %6 = vector.broadcast %cst_5 : f32 to vector<128x128xf32>
    %7 = arith.maximumf %5, %6 : vector<128x128xf32>
    %c0_6 = arith.constant 0 : index
    %c0_7 = arith.constant 0 : index
    %8 = vector.load %arg4[%c0_6, %c0_7] : memref<128x128xf32, #tpu.memory_space<vmem>>, vector<128x128xf32>
    tpu.vector_store %arg4[%c0_6, %c0_7], %7 {strides = array<i32>} : memref<128x128xf32, #tpu.memory_space<vmem>>, vector<128x128xf32>,
    return
  }
  func.func @transform_0(%arg0: i32) -> (i32, i32) {
    %c0_i32 = arith.constant 0 : i32
    %c0_i32_0 = arith.constant 0 : i32
    return %arg0, %c0_i32 : i32, i32
  }
  func.func @transform_1(%arg0: i32) -> (i32, i32) {
    %c0_i32 = arith.constant 0 : i32
    %c0_i32_0 = arith.constant 0 : i32
    %c0_i32_1 = arith.constant 0 : i32
    return %c0_i32, %c0_i32_0 : i32, i32
  }
  func.func @transform_2(%arg0: i32) -> (i32, i32) {
    %c0_i32 = arith.constant 0 : i32
    %c0_i32_0 = arith.constant 0 : i32
    %c0_i32_1 = arith.constant 0 : i32
    return %c0_i32, %c0_i32_0 : i32, i32
  }
  func.func @transform_3(%arg0: i32) -> (i32, i32) {
    %c0_i32 = arith.constant 0 : i32
    %c0_i32_0 = arith.constant 0 : i32
    return %arg0, %c0_i32 : i32, i32
  }
}

</mosaic_0001>

<bundles_post_ra>
// kernel: spatial_path_forward.4
= control target key start
LH: loop header
LB: loop body
LE: loop exit
PB: predicated region body
PF: predicated region fallthrough
CT: control target
= control target key end

     0   :  { %vm232_vm0 = vcmask 1041408   ;;  %vm207_vm1 = vcmask 556032   ;;  %s767_s1 = inlined_call_operand.vmem [shape: bf16[196,128], index: 1, kind: input, shape index: {}]   ;;  %s768_s0 = inlined_call_operand.vmem [shape: bf16[128,196], index: 0, kind: input, shape index: {}]   ;;  %s769_s2 = inlined_call_operand.vmem [shape: f32[1,128], index: 2, kind: input, shape index: {}]   ;;  %s770_s3 = inlined_call_operand.vmem [shape: f32[128,128], index: 3, kind: output, shape index: {}]  }
   0x1   :  { %v513_v0 = vld [vmem:[%s767_s1 + $0x38] sm:$0xff]  ;;  %v55_v1 = vld [vmem:[%s767_s1 + $0x60] sm:$0x3]  ;;  %v512_v3 = vld [vmem:[%s767_s1 + $0x30] sm:$0xff] }
   0x2   :  { %v181_v2 = vunpack.c.l.b16 %v55_v1  ;;  %236 = vmatpush.bf16.msra.mxu0 %v513_v0  ;;  %518 = vmatpush.bf16.msra.mxu2 %v513_v0  ;;  %v517_v6 = vld [vmem:[%s767_s1 + $0x58] sm:$0xff]  ;;  %v511_v7 = vld [vmem:[%s767_s1 + $0x28] sm:$0xff]  ;;  %v516_v8 = vld [vmem:[%s767_s1 + $0x50] sm:$0xff] }
   0x3   :  { %v510_v9 = vld [vmem:[%s767_s1 + $0x20] sm:$0xff]  ;;  %v515_v10 = vld [vmem:[%s767_s1 + $0x48] sm:$0xff]  ;;  %v509_v11 = vld [vmem:[%s767_s1 + $0x18] sm:$0xff] }
   0x4   :  { %v194_v4 = vpack.c.b16 %v181_v2, %v181_v2  ;;  %v514_v12 = vld [vmem:[%s767_s1 + $0x40] sm:$0xff]  ;;  %v508_v13 = vld [vmem:[%s767_s1 + $0x10] sm:$0xff]  ;;  %v374_v15 = vld [vmem:[%s768_s0 + $0x8] sm:$0xf0] }
   0x5   :  { %v490_v14 = vld [vmem:[%s768_s0 + $0x4] sm:$0xf]  ;;  %v500_v16 = vld [vmem:[%s768_s0 + $0x54] sm:$0xf]  ;;  %v414_v17 = vld [vmem:[%s768_s0 + $0x58] sm:$0xf0] }
   0x6   :  { %v234_v5 = vsel %vm232_vm0, %v194_v4, 0  ;;  %237 = vmatpush.bf16.msra.mxu0 %v512_v3  ;;  %519 = vmatpush.bf16.msra.mxu2 %v512_v3  ;;  %v377_v18 = vor.u32 %v490_v14, %v374_v15  ;;  %v507_v19 = vld [vmem:[%s767_s1 + $0x8] sm:$0xff]  ;;  %v417_v20 = vor.u32 %v500_v16, %v414_v17  ;;  %v506_v21 = vld [vmem:[%s767_s1] sm:$0xff]  ;;  %v492_v28 = vld [vmem:[%s768_s0 + $0x14] sm:$0xf] }
   0x7   :  { %288 = vmatpush.bf16.msra.mxu1 %v234_v5  ;;  %526 = vmatpush.bf16.msra.mxu3 %v234_v5  ;;  %v372_v22 = vld [vmem:[%s768_s0] sm:$0xf]  ;;  %v491_v23 = vld [vmem:[%s768_s0 + $0x4] sm:$0xf0]  ;;  %v382_v29 = vld [vmem:[%s768_s0 + $0x18] sm:$0xf0] }
   0x8   :  { %v404_v24 = vld [vmem:[%s768_s0 + $0x40] sm:$0xf]  ;;  %v499_v25 = vld [vmem:[%s768_s0 + $0x44] sm:$0xf0]  ;;  %v373_v26 = vor.u32 %v491_v23, %v372_v22  ;;  %v502_v30 = vld [vmem:[%s768_s0 + $0x64] sm:$0xf]  ;;  %v385_v32 = vor.u32 %v492_v28, %v382_v29 }
   0x9   :  { %v405_v27 = vor.u32 %v499_v25, %v404_v24  ;;  %v422_v31 = vld [vmem:[%s768_s0 + $0x68] sm:$0xf0]  ;;  %v380_v34 = vld [vmem:[%s768_s0 + $0x10] sm:$0xf]  ;;  %v493_v35 = vld [vmem:[%s768_s0 + $0x14] sm:$0xf0] }
   0xa   :  { %238 = vmatpush.bf16.msra.mxu0 %v511_v7  ;;  %520 = vmatpush.bf16.msra.mxu2 %v511_v7  ;;  %v425_v33 = vor.u32 %v502_v30, %v422_v31  ;;  %v412_v36 = vld [vmem:[%s768_s0 + $0x50] sm:$0xf]  ;;  %v501_v37 = vld [vmem:[%s768_s0 + $0x54] sm:$0xf0]  ;;  %v381_v38 = vor.u32 %v493_v35, %v380_v34  ;;  %v494_v40 = vld [vmem:[%s768_s0 + $0x24] sm:$0xf] }
   0xb   :  { %289 = vmatpush.bf16.msra.mxu1 %v517_v6  ;;  %527 = vmatpush.bf16.msra.mxu3 %v517_v6  ;;  %v413_v39 = vor.u32 %v501_v37, %v412_v36  ;;  %v390_v41 = vld [vmem:[%s768_s0 + $0x28] sm:$0xf0]  ;;  %v504_v42 = vld [vmem:[%s768_s0 + $0x74] sm:$0xf]  ;;  %v430_v43 = vld [vmem:[%s768_s0 + $0x78] sm:$0xf0] }
   0xc   :  { %v393_v44 = vor.u32 %v494_v40, %v390_v41  ;;  %v433_v45 = vor.u32 %v504_v42, %v430_v43  ;;  %v388_v46 = vld [vmem:[%s768_s0 + $0x20] sm:$0xf]  ;;  %v495_v47 = vld [vmem:[%s768_s0 + $0x24] sm:$0xf0]  ;;  %v496_v52 = vld [vmem:[%s768_s0 + $0x34] sm:$0xf] }
   0xd   :  { %v420_v48 = vld [vmem:[%s768_s0 + $0x60] sm:$0xf]  ;;  %v503_v49 = vld [vmem:[%s768_s0 + $0x64] sm:$0xf0]  ;;  %v389_v50 = vor.u32 %v495_v47, %v388_v46  ;;  %v398_v53 = vld [vmem:[%s768_s0 + $0x38] sm:$0xf0] }
   0xe   :  { %239 = vmatpush.bf16.msra.mxu0 %v510_v9  ;;  %521 = vmatpush.bf16.msra.mxu2 %v510_v9  ;;  %v421_v51 = vor.u32 %v503_v49, %v420_v48  ;;  %v401_v54 = vor.u32 %v496_v52, %v398_v53  ;;  %v396_v55 = vld [vmem:[%s768_s0 + $0x30] sm:$0xf]  ;;  %v497_v56 = vld [vmem:[%s768_s0 + $0x34] sm:$0xf0]  ;;  %v498_v61 = vld [vmem:[%s768_s0 + $0x44] sm:$0xf] }
   0xf   :  { %290 = vmatpush.bf16.msra.mxu1 %v516_v8  ;;  %528 = vmatpush.bf16.msra.mxu3 %v516_v8  ;;  %v428_v57 = vld [vmem:[%s768_s0 + $0x70] sm:$0xf]  ;;  %v505_v58 = vld [vmem:[%s768_s0 + $0x74] sm:$0xf0]  ;;  %v397_v59 = vor.u32 %v497_v56, %v396_v55  ;;  %v406_v62 = vld [vmem:[%s768_s0 + $0x48] sm:$0xf0] }
  0x10   :  { %v429_v60 = vor.u32 %v505_v58, %v428_v57  ;;  %v409_v63 = vor.u32 %v498_v61, %v406_v62  ;;  %v698_v1 = vld [vmem:[%s769_s2] ss:$0 sm:$0xff] }
  0x12   :  { %240 = vmatpush.bf16.msra.mxu0 %v509_v11  ;;  %522 = vmatpush.bf16.msra.mxu2 %v509_v11 }
  0x13   :  { %291 = vmatpush.bf16.msra.mxu1 %v515_v10  ;;  %529 = vmatpush.bf16.msra.mxu3 %v515_v10 }
  0x16   :  { %241 = vmatpush.bf16.msra.mxu0 %v508_v13  ;;  %523 = vmatpush.bf16.msra.mxu2 %v508_v13 }
  0x17   :  { %292 = vmatpush.bf16.msra.mxu1 %v514_v12  ;;  %530 = vmatpush.bf16.msra.mxu3 %v514_v12 }
  0x1a   :  { %482 = vmatmul.msk.bf16.vlgmr.msra.gmra.mxu1 %vm207_vm1, %v377_v18  ;;  %242 = vmatpush.bf16.msra.mxu0 %v507_v19 }
  0x1b   :  { %487 = vmatmul.msk.bf16.vlgmr.msra.gmra.mxu3 %vm207_vm1, %v417_v20  ;;  %524 = vmatpush.bf16.msra.mxu2 %v507_v19 }
  0x1e   :  { %243 = vmatpush.bf16.msra.mxu0 %v506_v21 }
  0x1f   :  { %525 = vmatpush.bf16.msra.mxu2 %v506_v21 }
  0x21   :  { %244 = vmatmul.bf16.vlgmr.msra.gmra.mxu0 %v373_v26 }
  0x22   :  { %264 = vmatmul.bf16.vlgmr.msra.gmra.mxu2 %v405_v27 }
  0x2a   :  { %483 = vmatmul.msk.bf16.gmra.mxu1 %vm207_vm1, %v385_v32 }
  0x2b   :  { %488 = vmatmul.msk.bf16.gmra.mxu3 %vm207_vm1, %v425_v33 }
  0x31   :  { %249 = vmatmul.bf16.gmra.mxu0 %v381_v38 }
  0x32   :  { %269 = vmatmul.bf16.gmra.mxu2 %v413_v39 }
  0x3a   :  { %484 = vmatmul.msk.bf16.gmra.mxu1 %vm207_vm1, %v393_v44 }
  0x3b   :  { %489 = vmatmul.msk.bf16.gmra.mxu3 %vm207_vm1, %v433_v45 }
  0x41   :  { %254 = vmatmul.bf16.gmra.mxu0 %v389_v50 }
  0x42   :  { %274 = vmatmul.bf16.gmra.mxu2 %v421_v51 }
  0x4a   :  { %485 = vmatmul.msk.bf16.gmra.mxu1 %vm207_vm1, %v401_v54 }
  0x51   :  { %259 = vmatmul.bf16.gmra.mxu0 %v397_v59 }
  0x52   :  { %279 = vmatmul.bf16.gmra.mxu2 %v429_v60 }
  0x5a   :  { %486 = vmatmul.msk.bf16.gmra.mxu1 %vm207_vm1, %v409_v63 }
  0x97   :  { %v294_v0 = vpop.f32.mrf.mxu1 }
  0x9e   :  { %v245_v3 = vpop.f32.mrf.mxu0  ;;  %v319_v14 = vpop.f32.mrf.mxu3 }
  0x9f   :  { %v296_v2 = vpop.f32.mrf.mxu1  ;;  %v246_v4 = vadd.f32 %v698_v1, %v245_v3 }
  0xa1   :  { %v295_v5 = vadd.f32 %v294_v0, %v246_v4 }
  0xa3   :  { %v334_v6 = vmax.f32 %v295_v5, 0.0 }
  0xa5   :  { %350 = vst [vmem:[%s770_s3] sm:$0xff] %v334_v6  ;;  %v265_v7 = vpop.f32.mrf.mxu2 }
  0xa6   :  { %v247_v9 = vpop.f32.mrf.mxu0  ;;  %v321_v25 = vpop.f32.mrf.mxu3  ;;  %v266_v59 = vadd.f32 %v698_v1, %v265_v7 }
  0xa7   :  { %v299_v8 = vpop.f32.mrf.mxu1  ;;  %v248_v10 = vadd.f32 %v698_v1, %v247_v9 }
  0xa9   :  { %v297_v11 = vadd.f32 %v296_v2, %v248_v10 }
  0xab   :  { %v335_v12 = vmax.f32 %v297_v11, 0.0 }
  0xad   :  { %351 = vst [vmem:[%s770_s3 + $0x8] sm:$0xff] %v335_v12  ;;  %v708_v13 = vpop.f32.mrf.mxu2 }
  0xae   :  { %v250_v16 = vpop.f32.mrf.mxu0  ;;  %v324_v37 = vpop.f32.mrf.mxu3  ;;  %v268_v9 = vadd.f32 %v698_v1, %v708_v13 }
  0xaf   :  { %v301_v15 = vpop.f32.mrf.mxu1  ;;  %v251_v17 = vadd.f32 %v698_v1, %v250_v16 }
  0xb1   :  { %v300_v18 = vadd.f32 %v299_v8, %v251_v17 }
  0xb3   :  { %v336_v19 = vmax.f32 %v300_v18, 0.0 }
  0xb5   :  { %352 = vst [vmem:[%s770_s3 + $0x10] sm:$0xff] %v336_v19  ;;  %v270_v20 = vpop.f32.mrf.mxu2 }
  0xb6   :  { %v271_v21 = vadd.f32 %v698_v1, %v270_v20  ;;  %v252_v23 = vpop.f32.mrf.mxu0  ;;  %v326_v49 = vpop.f32.mrf.mxu3 }
  0xb7   :  { %v304_v22 = vpop.f32.mrf.mxu1  ;;  %v253_v24 = vadd.f32 %v698_v1, %v252_v23 }
  0xb8   :  { %v320_v26 = vadd.f32 %v319_v14, %v271_v21 }
  0xb9   :  { %v302_v27 = vadd.f32 %v301_v15, %v253_v24 }
  0xba   :  { %v344_v28 = vmax.f32 %v320_v26, 0.0 }
  0xbb   :  { %v337_v29 = vmax.f32 %v302_v27, 0.0 }
  0xbc   :  { %360 = vst [vmem:[%s770_s3 + $0x50] sm:$0xff] %v344_v28 }
  0xbd   :  { %353 = vst [vmem:[%s770_s3 + $0x18] sm:$0xff] %v337_v29  ;;  %v272_v30 = vpop.f32.mrf.mxu2 }
  0xbe   :  { %v273_v31 = vadd.f32 %v698_v1, %v272_v30  ;;  %v255_v33 = vpop.f32.mrf.mxu0  ;;  %v329_v60 = vpop.f32.mrf.mxu3 }
  0xbf   :  { %v306_v32 = vpop.f32.mrf.mxu1  ;;  %v256_v34 = vadd.f32 %v698_v1, %v255_v33 }
  0xc0   :  { %v322_v35 = vadd.f32 %v321_v25, %v273_v31 }
  0xc1   :  { %v305_v36 = vadd.f32 %v304_v22, %v256_v34 }
  0xc2   :  { %v345_v38 = vmax.f32 %v322_v35, 0.0 }
  0xc3   :  { %v338_v39 = vmax.f32 %v305_v36, 0.0 }
  0xc4   :  { %361 = vst [vmem:[%s770_s3 + $0x58] sm:$0xff] %v345_v38 }
  0xc5   :  { %354 = vst [vmem:[%s770_s3 + $0x20] sm:$0xff] %v338_v39  ;;  %v275_v40 = vpop.f32.mrf.mxu2 }
  0xc6   :  { %v276_v41 = vadd.f32 %v698_v1, %v275_v40  ;;  %v257_v43 = vpop.f32.mrf.mxu0  ;;  %v331_v14 = vpop.f32.mrf.mxu3 }
  0xc7   :  { %v309_v42 = vpop.f32.mrf.mxu1  ;;  %v258_v44 = vadd.f32 %v698_v1, %v257_v43 }
  0xc8   :  { %v325_v45 = vadd.f32 %v324_v37, %v276_v41 }
  0xc9   :  { %v307_v46 = vadd.f32 %v306_v32, %v258_v44 }
  0xca   :  { %v346_v47 = vmax.f32 %v325_v45, 0.0 }
  0xcb   :  { %v339_v48 = vmax.f32 %v307_v46, 0.0 }
  0xcc   :  { %362 = vst [vmem:[%s770_s3 + $0x60] sm:$0xff] %v346_v47 }
  0xcd   :  { %355 = vst [vmem:[%s770_s3 + $0x28] sm:$0xff] %v339_v48  ;;  %v277_v50 = vpop.f32.mrf.mxu2 }
  0xce   :  { %v278_v51 = vadd.f32 %v698_v1, %v277_v50  ;;  %v260_v53 = vpop.f32.mrf.mxu0 }
  0xcf   :  { %v311_v52 = vpop.f32.mrf.mxu1  ;;  %v261_v54 = vadd.f32 %v698_v1, %v260_v53 }
  0xd0   :  { %v327_v55 = vadd.f32 %v326_v49, %v278_v51 }
  0xd1   :  { %v310_v56 = vadd.f32 %v309_v42, %v261_v54 }
  0xd2   :  { %v347_v57 = vmax.f32 %v327_v55, 0.0 }
  0xd3   :  { %v340_v58 = vmax.f32 %v310_v56, 0.0 }
  0xd4   :  { %363 = vst [vmem:[%s770_s3 + $0x68] sm:$0xff] %v347_v57 }
  0xd5   :  { %356 = vst [vmem:[%s770_s3 + $0x30] sm:$0xff] %v340_v58  ;;  %v280_v61 = vpop.f32.mrf.mxu2 }
  0xd6   :  { %v281_v62 = vadd.f32 %v698_v1, %v280_v61  ;;  %v262_v0 = vpop.f32.mrf.mxu0 }
  0xd7   :  { %v314_v63 = vpop.f32.mrf.mxu1  ;;  %v263_v3 = vadd.f32 %v698_v1, %v262_v0 }
  0xd8   :  { %v315_v2 = vadd.f32 %v314_v63, %v266_v59  ;;  %v330_v4 = vadd.f32 %v329_v60, %v281_v62 }
  0xd9   :  { %v312_v6 = vadd.f32 %v311_v52, %v263_v3 }
  0xda   :  { %v342_v5 = vmax.f32 %v315_v2, 0.0  ;;  %v348_v8 = vmax.f32 %v330_v4, 0.0 }
  0xdb   :  { %v341_v7 = vmax.f32 %v312_v6, 0.0 }
  0xdc   :  { %358 = vst [vmem:[%s770_s3 + $0x40] sm:$0xff] %v342_v5 }
  0xdd   :  { %364 = vst [vmem:[%s770_s3 + $0x70] sm:$0xff] %v348_v8  ;;  %v282_v10 = vpop.f32.mrf.mxu2 }
  0xde   :  { %357 = vst [vmem:[%s770_s3 + $0x38] sm:$0xff] %v341_v7  ;;  %v283_v11 = vadd.f32 %v698_v1, %v282_v10 }
  0xdf   :  { %v316_v12 = vpop.f32.mrf.mxu1 }
  0xe0   :  { %v317_v15 = vadd.f32 %v316_v12, %v268_v9  ;;  %v332_v16 = vadd.f32 %v331_v14, %v283_v11 }
  0xe2   :  { %v343_v17 = vmax.f32 %v317_v15, 0.0  ;;  %v349_v18 = vmax.f32 %v332_v16, 0.0 }
  0xe4   :  { %359 = vst [vmem:[%s770_s3 + $0x48] sm:$0xff] %v343_v17 }
  0xe5   :  { %365 = vst [vmem:[%s770_s3 + $0x78] sm:$0xff] %v349_v18 }

// kernel: spatial_path_forward.5
= control target key start
LH: loop header
LB: loop body
LE: loop exit
PB: predicated region body
PF: predicated region fallthrough
CT: control target
= control target key end

     0   :  { %vm555_vm0 = vcmask 523264   ;;  %s1794_s1 = inlined_call_operand.vmem [shape: bf16[576,128], index: 1, kind: input, shape index: {}]   ;;  %s1795_s2 = inlined_call_operand.vmem [shape: f32[1,128], index: 2, kind: input, shape index: {}]   ;;  %s1796_s0 = inlined_call_operand.vmem [shape: bf16[128,576], index: 0, kind: input, shape index: {}]   ;;  %s1797_s3 = inlined_call_operand.vmem [shape: bf16[128,128], index: 3, kind: output, shape index: {}]  }
   0x1   :  { %v1236_v0 = vld [vmem:[%s1794_s1 + $0x38] sm:$0xff]  ;;  %v1235_v1 = vld [vmem:[%s1794_s1 + $0x30] sm:$0xff]  ;;  %v1234_v2 = vld [vmem:[%s1794_s1 + $0x28] sm:$0xff] }
   0x2   :  { %1312 = vmatpush.bf16.msra.mxu1 %v1236_v0  ;;  %1313 = vmatpush.bf16.msra.mxu2 %v1236_v0  ;;  %v1233_v3 = vld [vmem:[%s1794_s1 + $0x20] sm:$0xff]  ;;  %v1232_v4 = vld [vmem:[%s1794_s1 + $0x18] sm:$0xff]  ;;  %v1231_v5 = vld [vmem:[%s1794_s1 + $0x10] sm:$0xff] }
   0x3   :  { %1314 = vmatpush.bf16.msra.mxu3 %v1236_v0  ;;  %580 = vmatpush.bf16.msra.mxu0 %v1236_v0  ;;  %v1230_v6 = vld [vmem:[%s1794_s1 + $0x8] sm:$0xff]  ;;  %v1229_v7 = vld [vmem:[%s1794_s1] sm:$0xff]  ;;  %v919_v8 = vld [vmem:[%s1796_s0 + $0x50] sm:$0xf] }
   0x4   :  { %v1201_v9 = vld [vmem:[%s1796_s0 + $0x60] sm:$0xf0]  ;;  %v959_v10 = vld [vmem:[%s1796_s0 + $0xa0] sm:$0xf]  ;;  %v1211_v11 = vld [vmem:[%s1796_s0 + $0xb0] sm:$0xf0] }
   0x5   :  { %v999_v12 = vld [vmem:[%s1796_s0 + $0xf0] sm:$0xf]  ;;  %v1221_v13 = vld [vmem:[%s1796_s0 + $0x100] sm:$0xf0]  ;;  %v879_v14 = vld [vmem:[%s1796_s0] sm:$0xf]  ;;  %v920_v18 = vor.u32 %v1201_v9, %v919_v8  ;;  %v960_v19 = vor.u32 %v1211_v11, %v959_v10 }
   0x6   :  { %1315 = vmatpush.bf16.msra.mxu1 %v1235_v1  ;;  %1316 = vmatpush.bf16.msra.mxu2 %v1235_v1  ;;  %v1191_v15 = vld [vmem:[%s1796_s0 + $0x10] sm:$0xf0]  ;;  %v1252_v16 = vld [vmem:[%s1794_s1 + $0xb8] sm:$0xff]  ;;  %v1000_v20 = vor.u32 %v1221_v13, %v999_v12  ;;  %v1250_v28 = vld [vmem:[%s1794_s1 + $0xa8] sm:$0xff] }
   0x7   :  { %1317 = vmatpush.bf16.msra.mxu3 %v1235_v1  ;;  %581 = vmatpush.bf16.msra.mxu0 %v1235_v1  ;;  %v1244_v17 = vld [vmem:[%s1794_s1 + $0x78] sm:$0xff]  ;;  %v880_v21 = vor.u32 %v1191_v15, %v879_v14  ;;  %v1251_v24 = vld [vmem:[%s1794_s1 + $0xb0] sm:$0xff]  ;;  %v1242_v29 = vld [vmem:[%s1794_s1 + $0x68] sm:$0xff] }
   0x8   :  { %v1260_v22 = vld [vmem:[%s1794_s1 + $0xf8] sm:$0xff]  ;;  %v1243_v25 = vld [vmem:[%s1794_s1 + $0x70] sm:$0xff]  ;;  %v1258_v30 = vld [vmem:[%s1794_s1 + $0xe8] sm:$0xff] }
   0x9   :  { %v1264_v23 = vld [vmem:[%s1794_s1 + $0x118] sm:$0xff]  ;;  %v1259_v26 = vld [vmem:[%s1794_s1 + $0xf0] sm:$0xff]  ;;  %v1262_v31 = vld [vmem:[%s1794_s1 + $0x108] sm:$0xff] }
   0xa   :  { %1318 = vmatpush.bf16.msra.mxu1 %v1234_v2  ;;  %1319 = vmatpush.bf16.msra.mxu2 %v1234_v2  ;;  %v1263_v27 = vld [vmem:[%s1794_s1 + $0x110] sm:$0xff]  ;;  %v1249_v32 = vld [vmem:[%s1794_s1 + $0xa0] sm:$0xff]  ;;  %v939_v35 = vld [vmem:[%s1796_s0 + $0x78] sm:$0xf] }
   0xb   :  { %1320 = vmatpush.bf16.msra.mxu3 %v1234_v2  ;;  %582 = vmatpush.bf16.msra.mxu0 %v1234_v2  ;;  %v1241_v33 = vld [vmem:[%s1794_s1 + $0x60] sm:$0xff]  ;;  %v1206_v36 = vld [vmem:[%s1796_s0 + $0x88] sm:$0xf0]  ;;  %v979_v37 = vld [vmem:[%s1796_s0 + $0xc8] sm:$0xf] }
   0xc   :  { %v1257_v34 = vld [vmem:[%s1794_s1 + $0xe0] sm:$0xff]  ;;  %v1216_v38 = vld [vmem:[%s1796_s0 + $0xd8] sm:$0xf0]  ;;  %v1019_v39 = vld [vmem:[%s1796_s0 + $0x118] sm:$0xf]  ;;  %v940_v46 = vor.u32 %v1206_v36, %v939_v35 }
   0xd   :  { %v1226_v40 = vld [vmem:[%s1796_s0 + $0x128] sm:$0xf0]  ;;  %v899_v41 = vld [vmem:[%s1796_s0 + $0x28] sm:$0xf]  ;;  %v1196_v42 = vld [vmem:[%s1796_s0 + $0x38] sm:$0xf0]  ;;  %v980_v47 = vor.u32 %v1216_v38, %v979_v37 }
   0xe   :  { %1321 = vmatpush.bf16.msra.mxu1 %v1233_v3  ;;  %1322 = vmatpush.bf16.msra.mxu2 %v1233_v3  ;;  %v1261_v43 = vld [vmem:[%s1794_s1 + $0x100] sm:$0xff]  ;;  %v1248_v44 = vld [vmem:[%s1794_s1 + $0x98] sm:$0xff]  ;;  %v1020_v48 = vor.u32 %v1226_v40, %v1019_v39  ;;  %v900_v49 = vor.u32 %v1196_v42, %v899_v41  ;;  %v1247_v51 = vld [vmem:[%s1794_s1 + $0x90] sm:$0xff] }
   0xf   :  { %1323 = vmatpush.bf16.msra.mxu3 %v1233_v3  ;;  %583 = vmatpush.bf16.msra.mxu0 %v1233_v3  ;;  %v1240_v45 = vld [vmem:[%s1794_s1 + $0x58] sm:$0xff]  ;;  %v1239_v52 = vld [vmem:[%s1794_s1 + $0x50] sm:$0xff]  ;;  %v1246_v54 = vld [vmem:[%s1794_s1 + $0x88] sm:$0xff] }
  0x10   :  { %v1256_v50 = vld [vmem:[%s1794_s1 + $0xd8] sm:$0xff]  ;;  %v1255_v53 = vld [vmem:[%s1794_s1 + $0xd0] sm:$0xff]  ;;  %v1238_v55 = vld [vmem:[%s1794_s1 + $0x48] sm:$0xff] }
  0x11   :  { %v1254_v56 = vld [vmem:[%s1794_s1 + $0xc8] sm:$0xff]  ;;  %v1245_v57 = vld [vmem:[%s1794_s1 + $0x80] sm:$0xff]  ;;  %v881_v61 = vld [vmem:[%s1796_s0 + $0x14] sm:$0xf0] }
  0x12   :  { %1324 = vmatpush.bf16.msra.mxu1 %v1232_v4  ;;  %1325 = vmatpush.bf16.msra.mxu2 %v1232_v4  ;;  %v1237_v58 = vld [vmem:[%s1794_s1 + $0x40] sm:$0xff]  ;;  %v887_v62 = vld [vmem:[%s1796_s0 + $0x8] sm:$0xf]  ;;  %v1192_v63 = vld [vmem:[%s1796_s0 + $0x18] sm:$0xf0] }
  0x13   :  { %1326 = vmatpush.bf16.msra.mxu3 %v1232_v4  ;;  %584 = vmatpush.bf16.msra.mxu0 %v1232_v4  ;;  %v1253_v59 = vld [vmem:[%s1794_s1 + $0xc0] sm:$0xff]  ;;  %v1190_v0 = vld [vmem:[%s1796_s0 + $0xc] sm:$0xf]  ;;  %v895_v2 = vld [vmem:[%s1796_s0 + $0x10] sm:$0xf] }
  0x14   :  { %v1189_v60 = vld [vmem:[%s1796_s0 + $0x4] sm:$0xf]  ;;  %v889_v1 = vld [vmem:[%s1796_s0 + $0x1c] sm:$0xf0]  ;;  %v1194_v8 = vld [vmem:[%s1796_s0 + $0x2c] sm:$0xf] }
  0x15   :  { %v1193_v3 = vld [vmem:[%s1796_s0 + $0x20] sm:$0xf0]  ;;  %v884_v4 = vor.u32 %v1189_v60, %v881_v61  ;;  %v901_v9 = vld [vmem:[%s1796_s0 + $0x3c] sm:$0xf0]  ;;  %v907_v10 = vld [vmem:[%s1796_s0 + $0x30] sm:$0xf] }
  0x16   :  { %1327 = vmatpush.bf16.msra.mxu1 %v1231_v5  ;;  %1328 = vmatpush.bf16.msra.mxu2 %v1231_v5  ;;  %v1197_v11 = vld [vmem:[%s1796_s0 + $0x40] sm:$0xf0]  ;;  %v1195_v12 = vld [vmem:[%s1796_s0 + $0x34] sm:$0xf]  ;;  %v909_v13 = vld [vmem:[%s1796_s0 + $0x44] sm:$0xf0] }
  0x17   :  { %1329 = vmatpush.bf16.msra.mxu3 %v1231_v5  ;;  %585 = vmatpush.bf16.msra.mxu0 %v1231_v5  ;;  %v888_v5 = vor.u32 %v1192_v63, %v887_v62  ;;  %v915_v14 = vld [vmem:[%s1796_s0 + $0x38] sm:$0xf]  ;;  %v1198_v15 = vld [vmem:[%s1796_s0 + $0x48] sm:$0xf0]  ;;  %v1207_v35 = vld [vmem:[%s1796_s0 + $0x90] sm:$0xf0] }
  0x18   :  { %v1205_v36 = vld [vmem:[%s1796_s0 + $0x84] sm:$0xf]  ;;  %v949_v37 = vld [vmem:[%s1796_s0 + $0x94] sm:$0xf0]  ;;  %v955_v38 = vld [vmem:[%s1796_s0 + $0x88] sm:$0xf] }
  0x19   :  { %v1208_v39 = vld [vmem:[%s1796_s0 + $0x98] sm:$0xf0]  ;;  %v952_v42 = vor.u32 %v1205_v36, %v949_v37  ;;  %v1215_v60 = vld [vmem:[%s1796_s0 + $0xd4] sm:$0xf]  ;;  %v989_v61 = vld [vmem:[%s1796_s0 + $0xe4] sm:$0xf0] }
  0x1a   :  { %1330 = vmatpush.bf16.msra.mxu1 %v1230_v6  ;;  %1331 = vmatpush.bf16.msra.mxu2 %v1230_v6  ;;  %v995_v62 = vld [vmem:[%s1796_s0 + $0xd8] sm:$0xf]  ;;  %v1218_v63 = vld [vmem:[%s1796_s0 + $0xe8] sm:$0xf0] }
  0x1b   :  { %1332 = vmatpush.bf16.msra.mxu3 %v1230_v6  ;;  %586 = vmatpush.bf16.msra.mxu0 %v1230_v6  ;;  %v892_v6 = vor.u32 %v1190_v0, %v889_v1 }
  0x1e   :  { %1333 = vmatpush.bf16.msra.mxu1 %v1229_v7  ;;  %1334 = vmatpush.bf16.msra.mxu2 %v1229_v7 }
  0x1f   :  { %1335 = vmatpush.bf16.msra.mxu3 %v1229_v7  ;;  %587 = vmatpush.bf16.msra.mxu0 %v1229_v7  ;;  %v896_v7 = vor.u32 %v1193_v3, %v895_v2  ;;  %v992_v2 = vor.u32 %v1215_v60, %v989_v61  ;;  %v996_v3 = vor.u32 %v1218_v63, %v995_v62 }
  0x21   :  { %598 = vmatmul.bf16.vlgmr.msra.gmra.mxu1 %v920_v18  ;;  %608 = vmatmul.bf16.vlgmr.msra.gmra.mxu2 %v960_v19  ;;  %v912_v18 = vor.u32 %v1195_v12, %v909_v13  ;;  %v916_v19 = vor.u32 %v1198_v15, %v915_v14 }
  0x22   :  { %678 = vmatpush.bf16.msrb.mxu2 %v1252_v16  ;;  %629 = vmatpush.bf16.msrb.mxu1 %v1244_v17  ;;  %v904_v16 = vor.u32 %v1194_v8, %v901_v9  ;;  %v908_v17 = vor.u32 %v1197_v11, %v907_v10  ;;  %v1220_v8 = vld [vmem:[%s1796_s0 + $0xfc] sm:$0xf]  ;;  %v1009_v9 = vld [vmem:[%s1796_s0 + $0x10c] sm:$0xf0]  ;;  %v1015_v10 = vld [vmem:[%s1796_s0 + $0x100] sm:$0xf] }
  0x23   :  { %618 = vmatmul.bf16.vlgmr.msra.gmra.mxu3 %v1000_v20  ;;  %588 = vmatmul.bf16.vlgmr.msra.gmra.mxu0 %v880_v21  ;;  %v1199_v20 = vld [vmem:[%s1796_s0 + $0x54] sm:$0xf]  ;;  %v921_v21 = vld [vmem:[%s1796_s0 + $0x64] sm:$0xf0]  ;;  %v1012_v15 = vor.u32 %v1220_v8, %v1009_v9 }
  0x24   :  { %727 = vmatpush.bf16.msrb.mxu3 %v1260_v22  ;;  %780 = vmatpush.bf16.msrb.mxu0 %v1264_v23  ;;  %v927_v22 = vld [vmem:[%s1796_s0 + $0x58] sm:$0xf]  ;;  %v1202_v23 = vld [vmem:[%s1796_s0 + $0x68] sm:$0xf0]  ;;  %v1223_v11 = vld [vmem:[%s1796_s0 + $0x110] sm:$0xf0] }
  0x26   :  { %679 = vmatpush.bf16.msrb.mxu2 %v1251_v24  ;;  %630 = vmatpush.bf16.msrb.mxu1 %v1243_v25  ;;  %v1200_v24 = vld [vmem:[%s1796_s0 + $0x5c] sm:$0xf]  ;;  %v929_v25 = vld [vmem:[%s1796_s0 + $0x6c] sm:$0xf0] }
  0x28   :  { %728 = vmatpush.bf16.msrb.mxu3 %v1259_v26  ;;  %781 = vmatpush.bf16.msrb.mxu0 %v1263_v27  ;;  %v935_v26 = vld [vmem:[%s1796_s0 + $0x60] sm:$0xf]  ;;  %v1203_v27 = vld [vmem:[%s1796_s0 + $0x70] sm:$0xf0] }
  0x2a   :  { %680 = vmatpush.bf16.msrb.mxu2 %v1250_v28  ;;  %631 = vmatpush.bf16.msrb.mxu1 %v1242_v29  ;;  %v924_v28 = vor.u32 %v1199_v20, %v921_v21  ;;  %v928_v29 = vor.u32 %v1202_v23, %v927_v22 }
  0x2c   :  { %729 = vmatpush.bf16.msrb.mxu3 %v1258_v30  ;;  %782 = vmatpush.bf16.msrb.mxu0 %v1262_v31  ;;  %v932_v30 = vor.u32 %v1200_v24, %v929_v25  ;;  %v936_v31 = vor.u32 %v1203_v27, %v935_v26  ;;  %v1224_v25 = vld [vmem:[%s1796_s0 + $0x11c] sm:$0xf]  ;;  %v1021_v26 = vld [vmem:[%s1796_s0 + $0x12c] sm:$0xf0]  ;;  %v1027_v27 = vld [vmem:[%s1796_s0 + $0x120] sm:$0xf] }
  0x2d   :  { %v1024_v36 = vor.u32 %v1224_v25, %v1021_v26 }
  0x2e   :  { %681 = vmatpush.bf16.msrb.mxu2 %v1249_v32  ;;  %632 = vmatpush.bf16.msrb.mxu1 %v1241_v33  ;;  %v1204_v32 = vld [vmem:[%s1796_s0 + $0x7c] sm:$0xf]  ;;  %v941_v33 = vld [vmem:[%s1796_s0 + $0x8c] sm:$0xf0] }
  0x2f   :  { %v944_v40 = vor.u32 %v1204_v32, %v941_v33  ;;  %v1228_v32 = vld [vmem:[%s1796_s0 + $0x138] sm:$0xf0] }
  0x30   :  { %730 = vmatpush.bf16.msrb.mxu3 %v1257_v34  ;;  %783 = vmatpush.bf16.msrb.mxu0 %v1261_v43  ;;  %v947_v34 = vld [vmem:[%s1796_s0 + $0x80] sm:$0xf]  ;;  %v956_v43 = vor.u32 %v1208_v39, %v955_v38 }
  0x31   :  { %603 = vmatmul.bf16.gmra.mxu1 %v940_v46  ;;  %613 = vmatmul.bf16.gmra.mxu2 %v980_v47  ;;  %v948_v41 = vor.u32 %v1207_v35, %v947_v34  ;;  %v967_v46 = vld [vmem:[%s1796_s0 + $0xa8] sm:$0xf]  ;;  %v1212_v47 = vld [vmem:[%s1796_s0 + $0xb8] sm:$0xf0] }
  0x32   :  { %682 = vmatpush.bf16.msrb.mxu2 %v1248_v44  ;;  %633 = vmatpush.bf16.msrb.mxu1 %v1240_v45  ;;  %v1209_v44 = vld [vmem:[%s1796_s0 + $0xa4] sm:$0xf]  ;;  %v961_v45 = vld [vmem:[%s1796_s0 + $0xb4] sm:$0xf0] }
  0x33   :  { %623 = vmatmul.bf16.gmra.mxu3 %v1020_v48  ;;  %593 = vmatmul.bf16.gmra.mxu0 %v900_v49  ;;  %v1210_v48 = vld [vmem:[%s1796_s0 + $0xac] sm:$0xf]  ;;  %v969_v49 = vld [vmem:[%s1796_s0 + $0xbc] sm:$0xf0] }
  0x34   :  { %731 = vmatpush.bf16.msrb.mxu3 %v1256_v50  ;;  %v975_v50 = vld [vmem:[%s1796_s0 + $0xb0] sm:$0xf] }
  0x36   :  { %683 = vmatpush.bf16.msrb.mxu2 %v1247_v51  ;;  %634 = vmatpush.bf16.msrb.mxu1 %v1239_v52  ;;  %v1213_v51 = vld [vmem:[%s1796_s0 + $0xc0] sm:$0xf0]  ;;  %v964_v52 = vor.u32 %v1209_v44, %v961_v45 }
  0x38   :  { %732 = vmatpush.bf16.msrb.mxu3 %v1255_v53  ;;  %v968_v53 = vor.u32 %v1212_v47, %v967_v46 }
  0x3a   :  { %684 = vmatpush.bf16.msrb.mxu2 %v1246_v54  ;;  %635 = vmatpush.bf16.msrb.mxu1 %v1238_v55  ;;  %v972_v54 = vor.u32 %v1210_v48, %v969_v49  ;;  %v976_v55 = vor.u32 %v1213_v51, %v975_v50 }
  0x3c   :  { %733 = vmatpush.bf16.msrb.mxu3 %v1254_v56  ;;  %v1214_v56 = vld [vmem:[%s1796_s0 + $0xcc] sm:$0xf] }
  0x3e   :  { %685 = vmatpush.bf16.msrb.mxu2 %v1245_v57  ;;  %636 = vmatpush.bf16.msrb.mxu1 %v1237_v58  ;;  %v981_v57 = vld [vmem:[%s1796_s0 + $0xdc] sm:$0xf0]  ;;  %v987_v58 = vld [vmem:[%s1796_s0 + $0xd0] sm:$0xf] }
  0x3f   :  { %v984_v0 = vor.u32 %v1214_v56, %v981_v57 }
  0x40   :  { %734 = vmatpush.bf16.msrb.mxu3 %v1253_v59  ;;  %v1217_v59 = vld [vmem:[%s1796_s0 + $0xe0] sm:$0xf0] }
  0x41   :  { %637 = vmatmul.bf16.vlgmr.msrb.gmra.mxu1 %v884_v4  ;;  %686 = vmatmul.bf16.vlgmr.msrb.gmra.mxu2 %v888_v5  ;;  %v988_v1 = vor.u32 %v1217_v59, %v987_v58  ;;  %v1219_v4 = vld [vmem:[%s1796_s0 + $0xf4] sm:$0xf]  ;;  %v1001_v5 = vld [vmem:[%s1796_s0 + $0x104] sm:$0xf0] }
  0x42   :  { %v1004_v12 = vor.u32 %v1219_v4, %v1001_v5 }
  0x43   :  { %735 = vmatmul.bf16.vlgmr.msrb.gmra.mxu3 %v892_v6  ;;  %1181 = vmatmul.msk.bf16.vlgmr.msrb.gmra.mxu0 %vm555_vm0, %v896_v7  ;;  %v1007_v6 = vld [vmem:[%s1796_s0 + $0xf8] sm:$0xf]  ;;  %v1222_v7 = vld [vmem:[%s1796_s0 + $0x108] sm:$0xf0] }
  0x44   :  { %v1008_v13 = vor.u32 %v1222_v7, %v1007_v6 }
  0x51   :  { %642 = vmatmul.bf16.gmra.mxu1 %v904_v16  ;;  %691 = vmatmul.bf16.gmra.mxu2 %v908_v17  ;;  %v1016_v16 = vor.u32 %v1223_v11, %v1015_v10 }
  0x53   :  { %740 = vmatmul.bf16.gmra.mxu3 %v912_v18  ;;  %1182 = vmatmul.msk.bf16.gmra.mxu0 %vm555_vm0, %v916_v19  ;;  %v1693_v18 = vld [vmem:[%s1795_s2] ss:$0 sm:$0xff] }
  0x61   :  { %647 = vmatmul.bf16.gmra.mxu1 %v924_v28  ;;  %696 = vmatmul.bf16.gmra.mxu2 %v928_v29  ;;  %v1227_v28 = vld [vmem:[%s1796_s0 + $0x130] sm:$0xf0]  ;;  %v1225_v29 = vld [vmem:[%s1796_s0 + $0x124] sm:$0xf] }
  0x62   :  { %v1028_v37 = vor.u32 %v1227_v28, %v1027_v27 }
  0x63   :  { %745 = vmatmul.bf16.gmra.mxu3 %v932_v30  ;;  %1183 = vmatmul.msk.bf16.gmra.mxu0 %vm555_vm0, %v936_v31  ;;  %v1029_v30 = vld [vmem:[%s1796_s0 + $0x134] sm:$0xf0]  ;;  %v1035_v31 = vld [vmem:[%s1796_s0 + $0x128] sm:$0xf] }
  0x71   :  { %652 = vmatmul.bf16.gmra.mxu1 %v944_v40  ;;  %701 = vmatmul.bf16.gmra.mxu2 %v948_v41  ;;  %v1032_v40 = vor.u32 %v1225_v29, %v1029_v30  ;;  %v1036_v41 = vor.u32 %v1228_v32, %v1035_v31 }
  0x73   :  { %750 = vmatmul.bf16.gmra.mxu3 %v952_v42  ;;  %1184 = vmatmul.msk.bf16.gmra.mxu0 %vm555_vm0, %v956_v43 }
  0x81   :  { %657 = vmatmul.bf16.gmra.mxu1 %v964_v52  ;;  %706 = vmatmul.bf16.gmra.mxu2 %v968_v53 }
  0x83   :  { %755 = vmatmul.bf16.gmra.mxu3 %v972_v54  ;;  %1185 = vmatmul.msk.bf16.gmra.mxu0 %vm555_vm0, %v976_v55 }
  0x91   :  { %662 = vmatmul.bf16.gmra.mxu1 %v984_v0  ;;  %711 = vmatmul.bf16.gmra.mxu2 %v988_v1 }
  0x93   :  { %760 = vmatmul.bf16.gmra.mxu3 %v992_v2  ;;  %1186 = vmatmul.msk.bf16.gmra.mxu0 %vm555_vm0, %v996_v3 }
  0x9e   :  { %v1687_v14 = vpop.f32.mrf.mxu1 }
  0xa0   :  { %v589_v17 = vpop.f32.mrf.mxu0 }
  0xa1   :  { %667 = vmatmul.bf16.gmra.mxu1 %v1004_v12  ;;  %716 = vmatmul.bf16.gmra.mxu2 %v1008_v13  ;;  %v590_v55 = vadd.f32 %v1693_v18, %v589_v17 }
  0xa3   :  { %765 = vmatmul.bf16.gmra.mxu3 %v1012_v15  ;;  %1187 = vmatmul.msk.bf16.gmra.mxu0 %vm555_vm0, %v1016_v16 }
  0xa4   :  { %v609_v19 = vpop.f32.mrf.mxu2 }
  0xa5   :  { %v1696_v20 = vadd.f32 %v1693_v18, %v609_v19 }
  0xa6   :  { %v619_v21 = vpop.f32.mrf.mxu3  ;;  %v1701_v23 = vpop.f32.mrf.mxu1 }
  0xa7   :  { %v1699_v22 = vadd.f32 %v1693_v18, %v619_v21 }
  0xa8   :  { %v591_v24 = vpop.f32.mrf.mxu0 }
  0xa9   :  { %v592_v62 = vadd.f32 %v1693_v18, %v591_v24 }
  0xac   :  { %v611_v33 = vpop.f32.mrf.mxu2 }
  0xad   :  { %v1728_v34 = vadd.f32 %v1693_v18, %v611_v33 }
  0xae   :  { %v621_v35 = vpop.f32.mrf.mxu3  ;;  %v1733_v39 = vpop.f32.mrf.mxu1 }
  0xaf   :  { %v1731_v38 = vadd.f32 %v1693_v18, %v621_v35 }
  0xb0   :  { %v594_v42 = vpop.f32.mrf.mxu0 }
  0xb1   :  { %672 = vmatmul.bf16.gmra.mxu1 %v1024_v36  ;;  %721 = vmatmul.bf16.gmra.mxu2 %v1028_v37  ;;  %v595_v9 = vadd.f32 %v1693_v18, %v594_v42  ;;  %v600_v36 = vadd.f32 %v1693_v18, %v1687_v14 }
  0xb3   :  { %770 = vmatmul.bf16.gmra.mxu3 %v1032_v40  ;;  %1188 = vmatmul.msk.bf16.gmra.mxu0 %vm555_vm0, %v1036_v41 }
  0xb4   :  { %v614_v43 = vpop.f32.mrf.mxu2 }
  0xb5   :  { %v1737_v44 = vadd.f32 %v1693_v18, %v614_v43 }
  0xb6   :  { %v624_v45 = vpop.f32.mrf.mxu3  ;;  %v1742_v47 = vpop.f32.mrf.mxu1 }
  0xb7   :  { %v1740_v46 = vadd.f32 %v1693_v18, %v624_v45 }
  0xb8   :  { %v596_v48 = vpop.f32.mrf.mxu0 }
  0xb9   :  { %v597_v24 = vadd.f32 %v1693_v18, %v596_v48 }
  0xbc   :  { %v616_v49 = vpop.f32.mrf.mxu2 }
  0xbd   :  { %v1745_v50 = vadd.f32 %v1693_v18, %v616_v49 }
  0xbe   :  { %v626_v51 = vpop.f32.mrf.mxu3  ;;  %v638_v53 = vpop.f32.mrf.mxu1 }
  0xbf   :  { %v1748_v52 = vadd.f32 %v1693_v18, %v626_v51  ;;  %v639_v57 = vadd.f32 %v638_v53, %v590_v55  ;;  %v602_v53 = vadd.f32 %v1693_v18, %v1701_v23 }
  0xc0   :  { %v785_v54 = vpop.f32.mrf.mxu0 }
  0xc4   :  { %v687_v56 = vpop.f32.mrf.mxu2 }
  0xc5   :  { %v688_v60 = vadd.f32 %v687_v56, %v639_v57 }
  0xc6   :  { %v736_v58 = vpop.f32.mrf.mxu3  ;;  %v640_v59 = vpop.f32.mrf.mxu1 }
  0xc7   :  { %v737_v63 = vadd.f32 %v736_v58, %v688_v60  ;;  %v641_v0 = vadd.f32 %v640_v59, %v592_v62 }
  0xc8   :  { %v787_v61 = vpop.f32.mrf.mxu0 }
  0xc9   :  { %v786_v5 = vadd.f32 %v785_v54, %v737_v63  ;;  %v605_v63 = vadd.f32 %v1693_v18, %v1733_v39 }
  0xcb   :  { %v825_v10 = vmax.f32 %v786_v5, 0.0 }
  0xcc   :  { %v689_v1 = vpop.f32.mrf.mxu2 }
  0xcd   :  { %v690_v2 = vadd.f32 %v689_v1, %v641_v0 }
  0xce   :  { %v738_v3 = vpop.f32.mrf.mxu3  ;;  %v643_v4 = vpop.f32.mrf.mxu1 }
  0xcf   :  { %v739_v6 = vadd.f32 %v738_v3, %v690_v2  ;;  %v644_v15 = vadd.f32 %v643_v4, %v595_v9 }
  0xd0   :  { %v790_v7 = vpop.f32.mrf.mxu0 }
  0xd1   :  { %v788_v8 = vadd.f32 %v787_v61, %v739_v6 }
  0xd3   :  { %v826_v11 = vmax.f32 %v788_v8, 0.0  ;;  %v607_v8 = vadd.f32 %v1693_v18, %v1742_v47 }
  0xd4   :  { %v692_v12 = vpop.f32.mrf.mxu2 }
  0xd5   :  { %v1268_v13 = vpack.c.bf16 %v826_v11, %v825_v10  ;;  %v693_v19 = vadd.f32 %v692_v12, %v644_v15 }
  0xd6   :  { %v741_v16 = vpop.f32.mrf.mxu3  ;;  %v645_v17 = vpop.f32.mrf.mxu1 }
  0xd7   :  { %1269 = vst [vmem:[%s1797_s3] sm:$0xff] %v1268_v13   ;;  %v742_v25 = vadd.f32 %v741_v16, %v693_v19  ;;  %v646_v26 = vadd.f32 %v645_v17, %v597_v24 }
  0xd8   :  { %v792_v21 = vpop.f32.mrf.mxu0 }
  0xd9   :  { %v791_v31 = vadd.f32 %v790_v7, %v742_v25 }
  0xdb   :  { %v827_v37 = vmax.f32 %v791_v31, 0.0 }
  0xdc   :  { %v694_v27 = vpop.f32.mrf.mxu2 }
  0xdd   :  { %v695_v28 = vadd.f32 %v694_v27, %v646_v26 }
  0xde   :  { %v743_v29 = vpop.f32.mrf.mxu3  ;;  %v648_v30 = vpop.f32.mrf.mxu1 }
  0xdf   :  { %v744_v32 = vadd.f32 %v743_v29, %v695_v28  ;;  %v649_v43 = vadd.f32 %v648_v30, %v600_v36 }
  0xe0   :  { %v795_v33 = vpop.f32.mrf.mxu0 }
  0xe1   :  { %v793_v35 = vadd.f32 %v792_v21, %v744_v32 }
  0xe3   :  { %v828_v40 = vmax.f32 %v793_v35, 0.0 }
  0xe4   :  { %v697_v41 = vpop.f32.mrf.mxu2 }
  0xe5   :  { %v1273_v42 = vpack.c.bf16 %v828_v40, %v827_v37  ;;  %v698_v49 = vadd.f32 %v697_v41, %v649_v43 }
  0xe6   :  { %v746_v45 = vpop.f32.mrf.mxu3  ;;  %v650_v48 = vpop.f32.mrf.mxu1 }
  0xe7   :  { %1305 = vst [vmem:[%s1797_s3 + $0x8] sm:$0xff] %v1273_v42   ;;  %v747_v54 = vadd.f32 %v746_v45, %v698_v49  ;;  %v651_v55 = vadd.f32 %v650_v48, %v602_v53 }
  0xe8   :  { %v797_v51 = vpop.f32.mrf.mxu0 }
  0xe9   :  { %v796_v59 = vadd.f32 %v795_v33, %v747_v54 }
  0xeb   :  { %v829_v0 = vmax.f32 %v796_v59, 0.0 }
  0xec   :  { %v699_v56 = vpop.f32.mrf.mxu2 }
  0xed   :  { %v700_v14 = vadd.f32 %v699_v56, %v651_v55 }
  0xee   :  { %v748_v57 = vpop.f32.mrf.mxu3  ;;  %v653_v58 = vpop.f32.mrf.mxu1 }
  0xef   :  { %v749_v60 = vadd.f32 %v748_v57, %v700_v14  ;;  %v654_v4 = vadd.f32 %v653_v58, %v605_v63 }
  0xf0   :  { %v800_v61 = vpop.f32.mrf.mxu0 }
  0xf1   :  { %v798_v62 = vadd.f32 %v797_v51, %v749_v60 }
  0xf3   :  { %v830_v1 = vmax.f32 %v798_v62, 0.0 }
  0xf4   :  { %v702_v2 = vpop.f32.mrf.mxu2 }
  0xf5   :  { %v1278_v3 = vpack.c.bf16 %v830_v1, %v829_v0  ;;  %v703_v6 = vadd.f32 %v702_v2, %v654_v4 }
  0xf6   :  { %v751_v5 = vpop.f32.mrf.mxu3  ;;  %v655_v23 = vpop.f32.mrf.mxu1 }
  0xf7   :  { %1306 = vst [vmem:[%s1797_s3 + $0x10] sm:$0xff] %v1278_v3   ;;  %v752_v9 = vadd.f32 %v751_v5, %v703_v6  ;;  %v656_v10 = vadd.f32 %v655_v23, %v607_v8 }
  0xf8   :  { %v802_v7 = vpop.f32.mrf.mxu0 }
  0xf9   :  { %v801_v15 = vadd.f32 %v800_v61, %v752_v9 }
  0xfb   :  { %v831_v21 = vmax.f32 %v801_v15, 0.0 }
  0xfc   :  { %v704_v11 = vpop.f32.mrf.mxu2 }
  0xfd   :  { %v705_v39 = vadd.f32 %v704_v11, %v656_v10 }
  0xfe   :  { %v753_v12 = vpop.f32.mrf.mxu3  ;;  %v658_v13 = vpop.f32.mrf.mxu1 }
  0xff   :  { %v754_v16 = vadd.f32 %v753_v12, %v705_v39  ;;  %v659_v27 = vadd.f32 %v658_v13, %v1696_v20 }
 0x100   :  { %v805_v17 = vpop.f32.mrf.mxu0 }
 0x101   :  { %v803_v19 = vadd.f32 %v802_v7, %v754_v16 }
 0x103   :  { %v832_v24 = vmax.f32 %v803_v19, 0.0 }
 0x104   :  { %v707_v25 = vpop.f32.mrf.mxu2 }
 0x105   :  { %v1283_v26 = vpack.c.bf16 %v832_v24, %v831_v21  ;;  %v708_v18 = vadd.f32 %v707_v25, %v659_v27 }
 0x106   :  { %v756_v28 = vpop.f32.mrf.mxu3  ;;  %v660_v29 = vpop.f32.mrf.mxu1 }
 0x107   :  { %1307 = vst [vmem:[%s1797_s3 + $0x18] sm:$0xff] %v1283_v26   ;;  %v757_v30 = vadd.f32 %v756_v28, %v708_v18  ;;  %v661_v31 = vadd.f32 %v660_v29, %v1728_v34 }
 0x108   :  { %v807_v47 = vpop.f32.mrf.mxu0 }
 0x109   :  { %v806_v37 = vadd.f32 %v805_v17, %v757_v30 }
 0x10b   :  { %v833_v20 = vmax.f32 %v806_v37, 0.0 }
 0x10c   :  { %v709_v32 = vpop.f32.mrf.mxu2 }
 0x10d   :  { %v710_v33 = vadd.f32 %v709_v32, %v661_v31 }
 0x10e   :  { %v758_v35 = vpop.f32.mrf.mxu3  ;;  %v663_v36 = vpop.f32.mrf.mxu1 }
 0x10f   :  { %v759_v40 = vadd.f32 %v758_v35, %v710_v33  ;;  %v664_v49 = vadd.f32 %v663_v36, %v1737_v44 }
 0x110   :  { %v810_v41 = vpop.f32.mrf.mxu0 }
 0x111   :  { %v808_v42 = vadd.f32 %v807_v47, %v759_v40 }
 0x113   :  { %v834_v43 = vmax.f32 %v808_v42, 0.0 }
 0x114   :  { %v712_v45 = vpop.f32.mrf.mxu2 }
 0x115   :  { %v1288_v48 = vpack.c.bf16 %v834_v43, %v833_v20  ;;  %v713_v34 = vadd.f32 %v712_v45, %v664_v49 }
 0x116   :  { %v761_v51 = vpop.f32.mrf.mxu3  ;;  %v665_v53 = vpop.f32.mrf.mxu1 }
 0x117   :  { %1308 = vst [vmem:[%s1797_s3 + $0x20] sm:$0xff] %v1288_v48   ;;  %v762_v55 = vadd.f32 %v761_v51, %v713_v34  ;;  %v666_v56 = vadd.f32 %v665_v53, %v1745_v50 }
 0x118   :  { %v812_v54 = vpop.f32.mrf.mxu0 }
 0x119   :  { %v811_v60 = vadd.f32 %v810_v41, %v762_v55 }
 0x11b   :  { %v835_v44 = vmax.f32 %v811_v60, 0.0 }
 0x11c   :  { %v714_v14 = vpop.f32.mrf.mxu2 }
 0x11d   :  { %v715_v57 = vadd.f32 %v714_v14, %v666_v56 }
 0x11e   :  { %v763_v58 = vpop.f32.mrf.mxu3  ;;  %v668_v59 = vpop.f32.mrf.mxu1 }
 0x11f   :  { %v764_v61 = vadd.f32 %v763_v58, %v715_v57  ;;  %v669_v3 = vadd.f32 %v668_v59, %v1699_v22 }
 0x120   :  { %v815_v63 = vpop.f32.mrf.mxu0 }
 0x121   :  { %v813_v62 = vadd.f32 %v812_v54, %v764_v61 }
 0x123   :  { %v836_v0 = vmax.f32 %v813_v62, 0.0 }
 0x124   :  { %v717_v1 = vpop.f32.mrf.mxu2 }
 0x125   :  { %v1293_v2 = vpack.c.bf16 %v836_v0, %v835_v44  ;;  %v718_v50 = vadd.f32 %v717_v1, %v669_v3 }
 0x126   :  { %v766_v4 = vpop.f32.mrf.mxu3  ;;  %v670_v5 = vpop.f32.mrf.mxu1 }
 0x127   :  { %1309 = vst [vmem:[%s1797_s3 + $0x28] sm:$0xff] %v1293_v2   ;;  %v767_v23 = vadd.f32 %v766_v4, %v718_v50  ;;  %v671_v6 = vadd.f32 %v670_v5, %v1731_v38 }
 0x128   :  { %v817_v7 = vpop.f32.mrf.mxu0 }
 0x129   :  { %v816_v39 = vadd.f32 %v815_v63, %v767_v23 }
 0x12b   :  { %v837_v15 = vmax.f32 %v816_v39, 0.0 }
 0x12c   :  { %v719_v8 = vpop.f32.mrf.mxu2 }
 0x12d   :  { %v720_v9 = vadd.f32 %v719_v8, %v671_v6 }
 0x12e   :  { %v768_v10 = vpop.f32.mrf.mxu3  ;;  %v673_v11 = vpop.f32.mrf.mxu1 }
 0x12f   :  { %v769_v12 = vadd.f32 %v768_v10, %v720_v9  ;;  %v674_v19 = vadd.f32 %v673_v11, %v1740_v46 }
 0x130   :  { %v820_v24 = vpop.f32.mrf.mxu0 }
 0x131   :  { %v818_v13 = vadd.f32 %v817_v7, %v769_v12 }
 0x133   :  { %v838_v22 = vmax.f32 %v818_v13, 0.0 }
 0x134   :  { %v722_v16 = vpop.f32.mrf.mxu2 }
 0x135   :  { %v1298_v17 = vpack.c.bf16 %v838_v22, %v837_v15  ;;  %v723_v38 = vadd.f32 %v722_v16, %v674_v19 }
 0x136   :  { %v771_v21 = vpop.f32.mrf.mxu3  ;;  %v675_v25 = vpop.f32.mrf.mxu1 }
 0x137   :  { %1310 = vst [vmem:[%s1797_s3 + $0x30] sm:$0xff] %v1298_v17   ;;  %v772_v26 = vadd.f32 %v771_v21, %v723_v38  ;;  %v676_v27 = vadd.f32 %v675_v25, %v1748_v52 }
 0x138   :  { %v822_v31 = vpop.f32.mrf.mxu0 }
 0x139   :  { %v821_v47 = vadd.f32 %v820_v24, %v772_v26 }
 0x13b   :  { %v839_v33 = vmax.f32 %v821_v47, 0.0 }
 0x13c   :  { %v724_v28 = vpop.f32.mrf.mxu2 }
 0x13d   :  { %v725_v29 = vadd.f32 %v724_v28, %v676_v27 }
 0x13e   :  { %v773_v18 = vpop.f32.mrf.mxu3 }
 0x13f   :  { %v774_v30 = vadd.f32 %v773_v18, %v725_v29 }
 0x141   :  { %v823_v32 = vadd.f32 %v822_v31, %v774_v30 }
 0x143   :  { %v840_v46 = vmax.f32 %v823_v32, 0.0 }
 0x145   :  { %v1303_v35 = vpack.c.bf16 %v840_v46, %v839_v33 }
 0x147   :  { %1311 = vst [vmem:[%s1797_s3 + $0x38] sm:$0xff] %v1303_v35  }

// kernel: spatial_path_forward.7
= control target key start
LH: loop header
LB: loop body
LE: loop exit
PB: predicated region body
PF: predicated region fallthrough
CT: control target
= control target key end

     0   :  { %vm107_vm0 = vcmask 523264   ;;  %s413_s1 = inlined_call_operand.vmem [shape: bf16[64,128], index: 1, kind: input, shape index: {}]   ;;  %s414_s2 = inlined_call_operand.vmem [shape: f32[1,128], index: 2, kind: input, shape index: {}]   ;;  %s415_s0 = inlined_call_operand.vmem [shape: bf16[128,64], index: 0, kind: input, shape index: {}]   ;;  %s416_s3 = inlined_call_operand.vmem [shape: f32[128,128], index: 3, kind: output, shape index: {}]  }
   0x1   :  { %v284_v0 = vld [vmem:[%s413_s1 + $0x18] sm:$0xff]  ;;  %v283_v1 = vld [vmem:[%s413_s1 + $0x10] sm:$0xff]  ;;  %v282_v2 = vld [vmem:[%s413_s1 + $0x8] sm:$0xff] }
   0x2   :  { %136 = vmatpush.bf16.msra.mxu0 %v284_v0  ;;  %285 = vmatpush.bf16.msra.mxu1 %v284_v0  ;;  %v281_v3 = vld [vmem:[%s413_s1] sm:$0xff]  ;;  %v275_v5 = vld [vmem:[%s415_s0 + $0x10] sm:$0xff]  ;;  %v274_v8 = vld [vmem:[%s415_s0 + $0x8] sm:$0xff] }
   0x3   :  { %286 = vmatpush.bf16.msra.mxu2 %v284_v0  ;;  %287 = vmatpush.bf16.msra.mxu3 %v284_v0  ;;  %v273_v4 = vld [vmem:[%s415_s0] sm:$0xff]  ;;  %v279_v7 = vld [vmem:[%s415_s0 + $0x30] sm:$0xff]  ;;  %v276_v9 = vld [vmem:[%s415_s0 + $0x18] sm:$0xff] }
   0x4   :  { %v277_v6 = vld [vmem:[%s415_s0 + $0x20] sm:$0xff]  ;;  %v278_v10 = vld [vmem:[%s415_s0 + $0x28] sm:$0xff]  ;;  %v280_v11 = vld [vmem:[%s415_s0 + $0x38] sm:$0xff] }
   0x5   :  { %v297_v12 = vld [vmem:[%s414_s2] ss:$0 sm:$0xff] }
   0x6   :  { %137 = vmatpush.bf16.msra.mxu0 %v283_v1  ;;  %288 = vmatpush.bf16.msra.mxu1 %v283_v1 }
   0x7   :  { %289 = vmatpush.bf16.msra.mxu2 %v283_v1  ;;  %290 = vmatpush.bf16.msra.mxu3 %v283_v1 }
   0xa   :  { %138 = vmatpush.bf16.msra.mxu0 %v282_v2  ;;  %291 = vmatpush.bf16.msra.mxu1 %v282_v2 }
   0xb   :  { %292 = vmatpush.bf16.msra.mxu2 %v282_v2  ;;  %293 = vmatpush.bf16.msra.mxu3 %v282_v2 }
   0xe   :  { %139 = vmatpush.bf16.msra.mxu0 %v281_v3  ;;  %294 = vmatpush.bf16.msra.mxu1 %v281_v3 }
   0xf   :  { %295 = vmatpush.bf16.msra.mxu2 %v281_v3  ;;  %296 = vmatpush.bf16.msra.mxu3 %v281_v3 }
  0x11   :  { %265 = vmatmul.msk.bf16.vlgmr.msra.gmra.mxu0 %vm107_vm0, %v273_v4  ;;  %267 = vmatmul.msk.bf16.vlgmr.msra.gmra.mxu1 %vm107_vm0, %v275_v5 }
  0x12   :  { %269 = vmatmul.msk.bf16.vlgmr.msra.gmra.mxu2 %vm107_vm0, %v277_v6  ;;  %271 = vmatmul.msk.bf16.vlgmr.msra.gmra.mxu3 %vm107_vm0, %v279_v7 }
  0x21   :  { %266 = vmatmul.msk.bf16.gmra.mxu0 %vm107_vm0, %v274_v8  ;;  %268 = vmatmul.msk.bf16.gmra.mxu1 %vm107_vm0, %v276_v9 }
  0x22   :  { %270 = vmatmul.msk.bf16.gmra.mxu2 %vm107_vm0, %v278_v10  ;;  %272 = vmatmul.msk.bf16.gmra.mxu3 %vm107_vm0, %v280_v11 }
  0x8e   :  { %v141_v13 = vpop.f32.mrf.mxu0  ;;  %v151_v14 = vpop.f32.mrf.mxu1 }
  0x8f   :  { %v142_v15 = vadd.f32 %v297_v12, %v141_v13  ;;  %v152_v16 = vadd.f32 %v297_v12, %v151_v14 }
  0x91   :  { %v181_v17 = vmax.f32 %v142_v15, 0.0  ;;  %v185_v18 = vmax.f32 %v152_v16, 0.0 }
  0x93   :  { %197 = vst [vmem:[%s416_s3] sm:$0xff] %v181_v17 }
  0x94   :  { %201 = vst [vmem:[%s416_s3 + $0x20] sm:$0xff] %v185_v18 }
  0x95   :  { %v161_v19 = vpop.f32.mrf.mxu2  ;;  %v171_v20 = vpop.f32.mrf.mxu3 }
  0x96   :  { %v162_v21 = vadd.f32 %v297_v12, %v161_v19  ;;  %v172_v22 = vadd.f32 %v297_v12, %v171_v20  ;;  %v143_v23 = vpop.f32.mrf.mxu0  ;;  %v153_v24 = vpop.f32.mrf.mxu1 }
  0x97   :  { %v144_v25 = vadd.f32 %v297_v12, %v143_v23  ;;  %v154_v26 = vadd.f32 %v297_v12, %v153_v24 }
  0x98   :  { %v189_v27 = vmax.f32 %v162_v21, 0.0  ;;  %v193_v28 = vmax.f32 %v172_v22, 0.0 }
  0x99   :  { %v182_v29 = vmax.f32 %v144_v25, 0.0  ;;  %v186_v30 = vmax.f32 %v154_v26, 0.0 }
  0x9a   :  { %205 = vst [vmem:[%s416_s3 + $0x40] sm:$0xff] %v189_v27 }
  0x9b   :  { %209 = vst [vmem:[%s416_s3 + $0x60] sm:$0xff] %v193_v28 }
  0x9c   :  { %198 = vst [vmem:[%s416_s3 + $0x8] sm:$0xff] %v182_v29 }
  0x9d   :  { %202 = vst [vmem:[%s416_s3 + $0x28] sm:$0xff] %v186_v30  ;;  %v163_v31 = vpop.f32.mrf.mxu2  ;;  %v173_v32 = vpop.f32.mrf.mxu3 }
  0x9e   :  { %v164_v33 = vadd.f32 %v297_v12, %v163_v31  ;;  %v174_v34 = vadd.f32 %v297_v12, %v173_v32  ;;  %v146_v35 = vpop.f32.mrf.mxu0  ;;  %v156_v36 = vpop.f32.mrf.mxu1 }
  0x9f   :  { %v147_v37 = vadd.f32 %v297_v12, %v146_v35  ;;  %v157_v38 = vadd.f32 %v297_v12, %v156_v36 }
  0xa0   :  { %v190_v39 = vmax.f32 %v164_v33, 0.0  ;;  %v194_v40 = vmax.f32 %v174_v34, 0.0 }
  0xa1   :  { %v183_v41 = vmax.f32 %v147_v37, 0.0  ;;  %v187_v42 = vmax.f32 %v157_v38, 0.0 }
  0xa2   :  { %206 = vst [vmem:[%s416_s3 + $0x48] sm:$0xff] %v190_v39 }
  0xa3   :  { %210 = vst [vmem:[%s416_s3 + $0x68] sm:$0xff] %v194_v40 }
  0xa4   :  { %199 = vst [vmem:[%s416_s3 + $0x10] sm:$0xff] %v183_v41 }
  0xa5   :  { %203 = vst [vmem:[%s416_s3 + $0x30] sm:$0xff] %v187_v42  ;;  %v166_v43 = vpop.f32.mrf.mxu2  ;;  %v176_v44 = vpop.f32.mrf.mxu3 }
  0xa6   :  { %v167_v45 = vadd.f32 %v297_v12, %v166_v43  ;;  %v177_v46 = vadd.f32 %v297_v12, %v176_v44  ;;  %v148_v47 = vpop.f32.mrf.mxu0  ;;  %v158_v48 = vpop.f32.mrf.mxu1 }
  0xa7   :  { %v149_v49 = vadd.f32 %v297_v12, %v148_v47  ;;  %v159_v50 = vadd.f32 %v297_v12, %v158_v48 }
  0xa8   :  { %v191_v51 = vmax.f32 %v167_v45, 0.0  ;;  %v195_v52 = vmax.f32 %v177_v46, 0.0 }
  0xa9   :  { %v184_v53 = vmax.f32 %v149_v49, 0.0  ;;  %v188_v54 = vmax.f32 %v159_v50, 0.0 }
  0xaa   :  { %207 = vst [vmem:[%s416_s3 + $0x50] sm:$0xff] %v191_v51 }
  0xab   :  { %211 = vst [vmem:[%s416_s3 + $0x70] sm:$0xff] %v195_v52 }
  0xac   :  { %200 = vst [vmem:[%s416_s3 + $0x18] sm:$0xff] %v184_v53 }
  0xad   :  { %204 = vst [vmem:[%s416_s3 + $0x38] sm:$0xff] %v188_v54  ;;  %v168_v55 = vpop.f32.mrf.mxu2  ;;  %v178_v56 = vpop.f32.mrf.mxu3 }
  0xae   :  { %v169_v57 = vadd.f32 %v297_v12, %v168_v55  ;;  %v179_v58 = vadd.f32 %v297_v12, %v178_v56 }
  0xb0   :  { %v192_v59 = vmax.f32 %v169_v57, 0.0  ;;  %v196_v60 = vmax.f32 %v179_v58, 0.0 }
  0xb2   :  { %208 = vst [vmem:[%s416_s3 + $0x58] sm:$0xff] %v192_v59 }
  0xb3   :  { %212 = vst [vmem:[%s416_s3 + $0x78] sm:$0xff] %v196_v60 }

</bundles_post_ra>
